<compile_context>
chip_gen: v7x
topology: tpu7x:2x2x1
jax: 0.10.0
libtpu: 0.0.40
codegen_flags: <defaults>
</compile_context>

<pallas_src>
import functools
import math

import jax
import jax.numpy as jnp
from jax.experimental import pallas as pl
from jax.experimental.pallas import tpu as pltpu


def conv1d_block_kernel(x_ref, w_ref, p_ref, o_ref, *scratch,
                        n_groups, eps, pad, use_im2col):
    bb, T, C_in = x_ref.shape
    K = w_ref.shape[0]
    C_out = w_ref.shape[2]
    Cg = C_out // n_groups
    R = bb * T

    xval = x_ref[...]                                   # (bb, T, C_in), MXU dtype

    # ---------------- Conv1d (single fused batch-folded matmul) ----------------
    if use_im2col:
        # Lane-aligned channels: build an im2col slab in VMEM scratch (same dtype
        # as the MXU operands), then one big matmul.
        xcol_ref = scratch[0]                           # (bb, T, K*C_in)
        for k in range(K):                              # K tiny and static
            d = k - pad
            lo, hi = k * C_in, (k + 1) * C_in
            if d == 0:
                xcol_ref[:, :, lo:hi] = xval
            elif abs(d) >= T:
                xcol_ref[:, :, lo:hi] = jnp.zeros((bb, T, C_in), xval.dtype)
            elif d > 0:
                xcol_ref[:, 0:T - d, lo:hi] = xval[:, d:T, :]
                xcol_ref[:, T - d:T, lo:hi] = jnp.zeros((bb, d, C_in), xval.dtype)
            else:
                xcol_ref[:, -d:T, lo:hi] = xval[:, 0:T + d, :]
                xcol_ref[:, 0:-d, lo:hi] = jnp.zeros((bb, -d, C_in), xval.dtype)
        w_mat = w_ref[...].reshape(K * C_in, C_out)     # (K*C_in, C_out)
        acc = jnp.dot(xcol_ref[...].reshape(R, K * C_in), w_mat,
                      preferred_element_type=jnp.float32)          # (R, C_out) f32
    else:
        # Lane-unaligned channels: K-accumulation form, no im2col scratch.
        acc = jnp.zeros((R, C_out), jnp.float32)
        for k in range(K):
            d = k - pad
            if d == 0:
                xs = xval
            elif abs(d) >= T:
                xs = jnp.zeros((bb, T, C_in), xval.dtype)
            elif d > 0:
                xs = jnp.concatenate(
                    [xval[:, d:T, :], jnp.zeros((bb, d, C_in), xval.dtype)], axis=1)
            else:
                xs = jnp.concatenate(
                    [jnp.zeros((bb, -d, C_in), xval.dtype), xval[:, 0:T + d, :]], axis=1)
            acc = acc + jnp.dot(xs.reshape(R, C_in), w_ref[k],
                                preferred_element_type=jnp.float32)

    # ---------------- bias + GroupNorm (single pass) ----------------
    p = p_ref[...]                                      # (3, C_out) f32
    bias, gam, bet = p[0:1, :], p[1:2, :], p[2:3, :]
    acc = acc + bias                                    # (R, C_out)

    acc3 = acc.reshape(bb, T, C_out)
    s1 = jnp.sum(acc3, axis=1)                          # (bb, C_out)
    s2 = jnp.sum(acc3 * acc3, axis=1)                   # (bb, C_out)

    # One-hot group-membership matrices (iota constants) -> per-(batch,group)
    # aggregation is a single pair of tiny MXU matmuls per grid step.
    ch = jax.lax.broadcasted_iota(jnp.int32, (C_out, n_groups), 0)
    gr = jax.lax.broadcasted_iota(jnp.int32, (C_out, n_groups), 1)
    M = ((ch >= gr * Cg) & (ch < (gr + 1) * Cg)).astype(jnp.float32)     # (C_out, G)
    gr2 = jax.lax.broadcasted_iota(jnp.int32, (n_groups, C_out), 0)
    ch2 = jax.lax.broadcasted_iota(jnp.int32, (n_groups, C_out), 1)
    MT = ((ch2 >= gr2 * Cg) & (ch2 < (gr2 + 1) * Cg)).astype(jnp.float32)  # (G, C_out)
    inv_n = 1.0 / float(Cg * T)

    stats = jnp.concatenate([s1, s2], axis=0)           # (2*bb, C_out)
    per_c = jnp.dot(jnp.dot(stats, M, preferred_element_type=jnp.float32),
                    MT, preferred_element_type=jnp.float32) * inv_n       # (2*bb, C_out)
    mean = per_c[0:bb, :]                               # (bb, C_out)
    var = jnp.maximum(per_c[bb:2 * bb, :] - mean * mean, 0.0)
    scale = jax.lax.rsqrt(var + eps) * gam              # affine folded into the FMA
    shift = bet - mean * scale
    yn = acc3 * scale[:, None, :] + shift[:, None, :]   # (bb, T, C_out)

    # ---------------- Mish: x*tanh(softplus(x)) == x*(e^2+2e)/(e^2+2e+2) --------
    # 1 exp + 1 approx reciprocal on the EUP; clamp keeps e^2 finite in f32
    # (mish(x) == x to f32 precision for x > 20 anyway).
    e = jnp.exp(jnp.minimum(yn, 20.0))
    num = e * (e + 2.0)
    out = yn * num * pl.reciprocal(num + 2.0, approx=True)

    o_ref[...] = out.astype(o_ref.dtype)                # one lane-dense store


def conv1d_block(x, w, b, gamma, beta, *, n_groups=8, eps=1e-5,
                 mxu_dtype=None, max_batch_block=64):
    """x: (B, C_in, T); w: (C_out, C_in, K); b/gamma/beta: (C_out,) -> (B, C_out, T).

    mxu_dtype: optional dtype for the conv-matmul operands (jnp.bfloat16 is
    recommended on all generations; v5e especially is HBM-bound). Accumulation,
    GroupNorm and Mish stay f32.
    """
    B, C_in, T = x.shape
    C_out, C_in_w, K = w.shape
    assert C_in_w == C_in
    assert K % 2 == 1, "even kernel_size does not match PyTorch padding=K//2 output length"
    assert C_out % n_groups == 0, "GroupNorm requires C_out % n_groups == 0"
    pad = K // 2
    out_dtype = x.dtype

    # Channel-last internal layout (channels on lanes). In a full network port
    # activations would stay (B, T, C) end-to-end and these transposes vanish.
    x_nlc = jnp.transpose(x, (0, 2, 1))                 # (B, T, C_in)
    w_t = jnp.transpose(w, (2, 1, 0))                   # (K, C_in, C_out)
    if mxu_dtype is not None:
        x_nlc = x_nlc.astype(mxu_dtype)                 # halves HBM traffic for x
        w_t = w_t.astype(mxu_dtype)
    mm_dtype = x_nlc.dtype
    params = jnp.stack([b, gamma, beta], axis=0).astype(jnp.float32)   # (3, C_out)

    use_im2col = (C_in % 128 == 0)                      # lane-aligned fused-K path

    # --- generation-aware VMEM budget ---
    try:
        vmem_cap = int(pltpu.get_tpu_info().vmem_capacity_bytes)
    except Exception:
        vmem_cap = 64 * 2 ** 20                         # conservative (v7x per-core)
    budget = int(0.70 * vmem_cap)

    mm_b = jnp.dtype(mm_dtype).itemsize
    out_b = jnp.dtype(out_dtype).itemsize

    def vmem_est(bb):
        est = 2 * bb * T * C_in * mm_b                  # x blocks (double-buffered)
        est += 2 * bb * T * C_out * out_b               # out blocks
        est += 2 * K * C_in * C_out * mm_b              # weights (double-buffered)
        est += 2 * 8 * C_out * 4                        # packed params (padded tile)
        if use_im2col:
            est += bb * T * K * C_in * mm_b             # im2col scratch (MXU dtype)
        est += 4 * bb * T * C_out * 4                   # f32 acc/yn/Mish temporaries
        return est

    bb = 1
    for cand in range(1, min(B, max_batch_block) + 1):  # largest bb within budget
        if vmem_est(cand) <= budget:
            bb = cand
    if B >= 2:
        bb = min(bb, (B + 1) // 2)                      # >=2 grid steps (v7x 2-TC, overlap)
    # Prefer bb*T a multiple of the MXU height once the batch loop is folded.
    if bb * T >= 256 and (bb * T) % 256 != 0:
        for cand in range(bb - 1, 0, -1):
            if (cand * T) % 256 == 0:
                bb = cand
                break

    # Non-divisor batches: pad B (GroupNorm is per-batch, padded rows are inert).
    B_pad = ((B + bb - 1) // bb) * bb
    if B_pad != B:
        x_nlc = jnp.pad(x_nlc, ((0, B_pad - B), (0, 0), (0, 0)))
    grid = (B_pad // bb,)

    scratch_shapes = ([pltpu.VMEM((bb, T, K * C_in), mm_dtype)] if use_im2col else [])

    kern = functools.partial(conv1d_block_kernel, n_groups=n_groups, eps=eps,
                             pad=pad, use_im2col=use_im2col)
    out_nlc = pl.pallas_call(
        kern,
        out_shape=jax.ShapeDtypeStruct((B_pad, T, C_out), out_dtype),
        grid=grid,
        in_specs=[
            pl.BlockSpec((bb, T, C_in), lambda i: (i, 0, 0)),
            pl.BlockSpec((K, C_in, C_out), lambda i: (0, 0, 0)),   # grid-invariant
            pl.BlockSpec((3, C_out), lambda i: (0, 0)),            # b/gamma/beta packed
        ],
        out_specs=pl.BlockSpec((bb, T, C_out), lambda i: (i, 0, 0)),
        scratch_shapes=scratch_shapes,
        compiler_params=pltpu.CompilerParams(
            dimension_semantics=("parallel",),
            vmem_limit_bytes=budget),
    )(x_nlc, w_t, params)

    if B_pad != B:
        out_nlc = out_nlc[:B]
    return jnp.transpose(out_nlc, (0, 2, 1))            # back to (B, C_out, T)


def conv1d_block_reference(x, w, b, gamma, beta, *, n_groups=8, eps=1e-5):
    pad = w.shape[-1] // 2
    y = jax.lax.conv_general_dilated(
        x, w, window_strides=(1,), padding=[(pad, pad)],
        dimension_numbers=("NCH", "OIH", "NCH"))
    y = y + b[None, :, None]
    B, C, T = y.shape
    yg = y.reshape(B, n_groups, -1)
    mean = yg.mean(axis=-1, keepdims=True)
    var = ((yg - mean) ** 2).mean(axis=-1, keepdims=True)
    yn = ((yg - mean) / jnp.sqrt(var + eps)).reshape(B, C, T)
    yn = yn * gamma[None, :, None] + beta[None, :, None]
    return yn * jnp.tanh(jax.nn.softplus(yn))


def _make_inputs(key, B, C_in, C_out, T, K):
    kx, kw, kb, kg, kbt = jax.random.split(key, 5)
    x = jax.random.normal(kx, (B, C_in, T), dtype=jnp.float32)
    bound = 1.0 / math.sqrt(C_in * K)
    w = jax.random.uniform(kw, (C_out, C_in, K), jnp.float32, -bound, bound)
    b = jax.random.uniform(kb, (C_out,), jnp.float32, -bound, bound)
    gamma = 1.0 + 0.1 * jax.random.normal(kg, (C_out,), jnp.float32)
    beta = 0.1 * jax.random.normal(kbt, (C_out,), jnp.float32)
    return x, w, b, gamma, beta


if __name__ == "__main__":
    key = jax.random.PRNGKey(0)
    k1, k2 = jax.random.split(key)

    # --- Test 1: small shapes consistent with Conv1dBlock(4, 16, 3, n_groups=8),
    # input (B, C_in, T); exercises the K-accumulation (lane-unaligned) path. ---
    B, C_in, C_out, T, K, G = 2, 4, 16, 16, 3, 8
    x, w, b, gamma, beta = _make_inputs(k1, B, C_in, C_out, T, K)
    ref = conv1d_block_reference(x, w, b, gamma, beta, n_groups=G)

    out = jax.block_until_ready(conv1d_block(x, w, b, gamma, beta, n_groups=G))
    assert out.shape == (B, C_out, T)
    assert jnp.allclose(out, ref, atol=2e-2, rtol=2e-2), "f32 kernel mismatch vs reference"

    # bf16 MXU operands (recommended on all generations), f32 accumulation/stats.
    out_bf16 = jax.block_until_ready(
        conv1d_block(x, w, b, gamma, beta, n_groups=G, mxu_dtype=jnp.bfloat16))
    assert out_bf16.shape == (B, C_out, T)
    assert jnp.allclose(out_bf16, ref, atol=1e-1, rtol=1e-1), "bf16 kernel mismatch vs reference"

    # --- Test 2: lane-aligned channels + non-divisor batch -> fused-K im2col
    # path and the padded-batch tail path. ---
    B2, C_in2, C_out2, T2, K2, G2 = 3, 128, 256, 16, 5, 8
    x2, w2, b2, g2, bt2 = _make_inputs(k2, B2, C_in2, C_out2, T2, K2)
    ref2 = conv1d_block_reference(x2, w2, b2, g2, bt2, n_groups=G2)
    out2 = jax.block_until_ready(conv1d_block(x2, w2, b2, g2, bt2, n_groups=G2))
    assert out2.shape == (B2, C_out2, T2)
    assert jnp.allclose(out2, ref2, atol=2e-2, rtol=2e-2), "im2col kernel mismatch vs reference"

    print("KERNEL_OK")
</pallas_src>

<mosaic_0001>
module attributes {stable_mosaic.version = 11 : i64} {
  func.func @conv1d_block_kernel(%arg0: i32, %arg1: memref<1x16x4xf32, #tpu.memory_space<vmem>>, %arg2: memref<3x4x16xf32, #tpu.memory_space<vmem>>, %arg3: memref<3x16xf32, #tpu.memory_space<vmem>>, %arg4: memref<1x16x16xf32, #tpu.memory_space<vmem>>) attributes {dimension_semantics = [#tpu.dimension_semantics<parallel>], iteration_bounds = array<i64: 2>, scalar_prefetch = 0 : i64, scratch_operands = 0 : i64, tpu.core_type = #tpu.core_type<tc>, window_params = [{transform_indices = @transform_0, window_bounds = array<i64: 1, 16, 4>}, {pipeline_mode = #tpu.pipeline_mode<synchronous>, transform_indices = @transform_1, window_bounds = array<i64: 3, 4, 16>}, {pipeline_mode = #tpu.pipeline_mode<synchronous>, transform_indices = @transform_2, window_bounds = array<i64: 3, 16>}, {transform_indices = @transform_3, window_bounds = array<i64: 1, 16, 16>}]} {
    %c0 = arith.constant 0 : index
    %c0_0 = arith.constant 0 : index
    %c0_1 = arith.constant 0 : index
    %0 = vector.load %arg1[%c0, %c0_0, %c0_1] : memref<1x16x4xf32, #tpu.memory_space<vmem>>, vector<1x16x4xf32>
    %cst = arith.constant 0.000000e+00 : f32
    %1 = vector.broadcast %cst : f32 to vector<16x16xf32>
    %cst_2 = arith.constant 0.000000e+00 : f32
    %2 = vector.broadcast %cst_2 : f32 to vector<1x1x4xf32>
    %3 = vector.extract_strided_slice %0 {offsets = [0, 0, 0], sizes = [1, 15, 4], strides = [1, 1, 1]} : vector<1x16x4xf32> to vector<1x15x4xf32>
    %4 = tpu.concatenate %2, %3 in 1 : vector<1x1x4xf32>, vector<1x15x4xf32> -> vector<1x16x4xf32>
    %5 = vector.shape_cast %4 : vector<1x16x4xf32> to vector<16x4xf32>
    %c0_3 = arith.constant 0 : index
    %c0_4 = arith.constant 0 : index
    %c0_5 = arith.constant 0 : index
    %6 = vector.load %arg2[%c0_3, %c0_4, %c0_5] : memref<3x4x16xf32, #tpu.memory_space<vmem>>, vector<1x4x16xf32>
    %7 = vector.shape_cast %6 : vector<1x4x16xf32> to vector<4x16xf32>
    %cst_6 = arith.constant dense<0.000000e+00> : vector<16x16xf32>
    %8 = tpu.matmul %5, %7, %cst_6 {dimension_numbers = #tpu.dot_dimension_numbers<[1], [0], [0], [1], [0, 0, 1, 1], [], []>} : vector<16x4xf32>, vector<4x16xf32>, vector<16x16xf32> -> vector<16x16xf32>
    %9 = arith.addf %1, %8 : vector<16x16xf32>
    %10 = vector.shape_cast %0 : vector<1x16x4xf32> to vector<16x4xf32>
    %c1 = arith.constant 1 : index
    %c0_7 = arith.constant 0 : index
    %c0_8 = arith.constant 0 : index
    %11 = vector.load %arg2[%c1, %c0_7, %c0_8] : memref<3x4x16xf32, #tpu.memory_space<vmem>>, vector<1x4x16xf32>
    %12 = vector.shape_cast %11 : vector<1x4x16xf32> to vector<4x16xf32>
    %cst_9 = arith.constant dense<0.000000e+00> : vector<16x16xf32>
    %13 = tpu.matmul %10, %12, %cst_9 {dimension_numbers = #tpu.dot_dimension_numbers<[1], [0], [0], [1], [0, 0, 1, 1], [], []>} : vector<16x4xf32>, vector<4x16xf32>, vector<16x16xf32> -> vector<16x16xf32>
    %14 = arith.addf %9, %13 : vector<16x16xf32>
    %15 = vector.extract_strided_slice %0 {offsets = [0, 1, 0], sizes = [1, 15, 4], strides = [1, 1, 1]} : vector<1x16x4xf32> to vector<1x15x4xf32>
    %cst_10 = arith.constant 0.000000e+00 : f32
    %16 = vector.broadcast %cst_10 : f32 to vector<1x1x4xf32>
    %17 = tpu.concatenate %15, %16 in 1 : vector<1x15x4xf32>, vector<1x1x4xf32> -> vector<1x16x4xf32>
    %18 = vector.shape_cast %17 : vector<1x16x4xf32> to vector<16x4xf32>
    %c2 = arith.constant 2 : index
    %c0_11 = arith.constant 0 : index
    %c0_12 = arith.constant 0 : index
    %19 = vector.load %arg2[%c2, %c0_11, %c0_12] : memref<3x4x16xf32, #tpu.memory_space<vmem>>, vector<1x4x16xf32>
    %20 = vector.shape_cast %19 : vector<1x4x16xf32> to vector<4x16xf32>
    %cst_13 = arith.constant dense<0.000000e+00> : vector<16x16xf32>
    %21 = tpu.matmul %18, %20, %cst_13 {dimension_numbers = #tpu.dot_dimension_numbers<[1], [0], [0], [1], [0, 0, 1, 1], [], []>} : vector<16x4xf32>, vector<4x16xf32>, vector<16x16xf32> -> vector<16x16xf32>
    %22 = arith.addf %14, %21 : vector<16x16xf32>
    %c0_14 = arith.constant 0 : index
    %c0_15 = arith.constant 0 : index
    %23 = vector.load %arg3[%c0_14, %c0_15] : memref<3x16xf32, #tpu.memory_space<vmem>>, vector<3x16xf32>
    %24 = vector.extract_strided_slice %23 {offsets = [0, 0], sizes = [1, 16], strides = [1, 1]} : vector<3x16xf32> to vector<1x16xf32>
    %25 = vector.extract_strided_slice %23 {offsets = [1, 0], sizes = [1, 16], strides = [1, 1]} : vector<3x16xf32> to vector<1x16xf32>
    %26 = vector.extract_strided_slice %23 {offsets = [2, 0], sizes = [1, 16], strides = [1, 1]} : vector<3x16xf32> to vector<1x16xf32>
    %27 = vector.broadcast %24 : vector<1x16xf32> to vector<16x16xf32>
    %28 = arith.addf %22, %27 : vector<16x16xf32>
    %29 = vector.shape_cast %28 : vector<16x16xf32> to vector<1x16x16xf32>
    %cst_16 = arith.constant dense<0.000000e+00> : vector<1x16xf32>
    %30 = vector.multi_reduction <add>, %29, %cst_16 [1] : vector<1x16x16xf32> to vector<1x16xf32>
    %31 = arith.mulf %29, %29 : vector<1x16x16xf32>
    %cst_17 = arith.constant dense<0.000000e+00> : vector<1x16xf32>
    %32 = vector.multi_reduction <add>, %31, %cst_17 [1] : vector<1x16x16xf32> to vector<1x16xf32>
    %33 = tpu.iota {dimensions = array<i32: 0>} : vector<16x8xi32>
    %34 = tpu.iota {dimensions = array<i32: 1>} : vector<16x8xi32>
    %c2_i32 = arith.constant 2 : i32
    %35 = vector.broadcast %c2_i32 : i32 to vector<16x8xi32>
    %36 = arith.muli %34, %35 : vector<16x8xi32>
    %37 = arith.cmpi sge, %33, %36 : vector<16x8xi32>
    %c1_i32 = arith.constant 1 : i32
    %38 = vector.broadcast %c1_i32 : i32 to vector<16x8xi32>
    %39 = arith.addi %34, %38 : vector<16x8xi32>
    %c2_i32_18 = arith.constant 2 : i32
    %40 = vector.broadcast %c2_i32_18 : i32 to vector<16x8xi32>
    %41 = arith.muli %39, %40 : vector<16x8xi32>
    %42 = arith.cmpi slt, %33, %41 : vector<16x8xi32>
    %43 = arith.andi %37, %42 : vector<16x8xi1>
    %44 = arith.extui %43 : vector<16x8xi1> to vector<16x8xi32>
    %45 = arith.sitofp %44 : vector<16x8xi32> to vector<16x8xf32>
    %46 = tpu.iota {dimensions = array<i32: 0>} : vector<8x16xi32>
    %47 = tpu.iota {dimensions = array<i32: 1>} : vector<8x16xi32>
    %c2_i32_19 = arith.constant 2 : i32
    %48 = vector.broadcast %c2_i32_19 : i32 to vector<8x16xi32>
    %49 = arith.muli %46, %48 : vector<8x16xi32>
    %50 = arith.cmpi sge, %47, %49 : vector<8x16xi32>
    %c1_i32_20 = arith.constant 1 : i32
    %51 = vector.broadcast %c1_i32_20 : i32 to vector<8x16xi32>
    %52 = arith.addi %46, %51 : vector<8x16xi32>
    %c2_i32_21 = arith.constant 2 : i32
    %53 = vector.broadcast %c2_i32_21 : i32 to vector<8x16xi32>
    %54 = arith.muli %52, %53 : vector<8x16xi32>
    %55 = arith.cmpi slt, %47, %54 : vector<8x16xi32>
    %56 = arith.andi %50, %55 : vector<8x16xi1>
    %57 = arith.extui %56 : vector<8x16xi1> to vector<8x16xi32>
    %58 = arith.sitofp %57 : vector<8x16xi32> to vector<8x16xf32>
    %59 = tpu.concatenate %30, %32 in 0 : vector<1x16xf32>, vector<1x16xf32> -> vector<2x16xf32>
    %cst_22 = arith.constant dense<0.000000e+00> : vector<2x8xf32>
    %60 = tpu.matmul %59, %45, %cst_22 {dimension_numbers = #tpu.dot_dimension_numbers<[1], [0], [0], [1], [0, 0, 1, 1], [], []>} : vector<2x16xf32>, vector<16x8xf32>, vector<2x8xf32> -> vector<2x8xf32>
    %cst_23 = arith.constant dense<0.000000e+00> : vector<2x16xf32>
    %61 = tpu.matmul %60, %58, %cst_23 {dimension_numbers = #tpu.dot_dimension_numbers<[1], [0], [0], [1], [0, 0, 1, 1], [], []>} : vector<2x8xf32>, vector<8x16xf32>, vector<2x16xf32> -> vector<2x16xf32>
    %cst_24 = arith.constant 3.125000e-02 : f32
    %62 = vector.broadcast %cst_24 : f32 to vector<2x16xf32>
    %63 = arith.mulf %61, %62 : vector<2x16xf32>
    %64 = vector.extract_strided_slice %63 {offsets = [0, 0], sizes = [1, 16], strides = [1, 1]} : vector<2x16xf32> to vector<1x16xf32>
    %65 = vector.extract_strided_slice %63 {offsets = [1, 0], sizes = [1, 16], strides = [1, 1]} : vector<2x16xf32> to vector<1x16xf32>
    %66 = arith.mulf %64, %64 : vector<1x16xf32>
    %67 = arith.subf %65, %66 : vector<1x16xf32>
    %cst_25 = arith.constant 0.000000e+00 : f32
    %68 = vector.broadcast %cst_25 : f32 to vector<1x16xf32>
    %69 = arith.maximumf %67, %68 : vector<1x16xf32>
    %cst_26 = arith.constant 9.99999974E-6 : f32
    %70 = vector.broadcast %cst_26 : f32 to vector<1x16xf32>
    %71 = arith.addf %69, %70 : vector<1x16xf32>
    %72 = math.rsqrt %71 : vector<1x16xf32>
    %73 = arith.mulf %72, %25 : vector<1x16xf32>
    %74 = arith.mulf %64, %73 : vector<1x16xf32>
    %75 = arith.subf %26, %74 : vector<1x16xf32>
    %76 = vector.shape_cast %73 : vector<1x16xf32> to vector<1x1x16xf32>
    %77 = vector.broadcast %76 : vector<1x1x16xf32> to vector<1x16x16xf32>
    %78 = arith.mulf %29, %77 : vector<1x16x16xf32>
    %79 = vector.shape_cast %75 : vector<1x16xf32> to vector<1x1x16xf32>
    %80 = vector.broadcast %79 : vector<1x1x16xf32> to vector<1x16x16xf32>
    %81 = arith.addf %78, %80 : vector<1x16x16xf32>
    %cst_27 = arith.constant 2.000000e+01 : f32
    %82 = vector.broadcast %cst_27 : f32 to vector<1x16x16xf32>
    %83 = arith.minimumf %81, %82 : vector<1x16x16xf32>
    %84 = math.exp %83 : vector<1x16x16xf32>
    %cst_28 = arith.constant 2.000000e+00 : f32
    %85 = vector.broadcast %cst_28 : f32 to vector<1x16x16xf32>
    %86 = arith.addf %84, %85 : vector<1x16x16xf32>
    %87 = arith.mulf %84, %86 : vector<1x16x16xf32>
    %88 = arith.mulf %81, %87 : vector<1x16x16xf32>
    %cst_29 = arith.constant 2.000000e+00 : f32
    %89 = vector.broadcast %cst_29 : f32 to vector<1x16x16xf32>
    %90 = arith.addf %87, %89 : vector<1x16x16xf32>
    %91 = tpu.reciprocal %90 {approx = true} : vector<1x16x16xf32> -> vector<1x16x16xf32>
    %92 = arith.mulf %88, %91 : vector<1x16x16xf32>
    %c0_30 = arith.constant 0 : index
    %c0_31 = arith.constant 0 : index
    %c0_32 = arith.constant 0 : index
    %93 = vector.load %arg4[%c0_30, %c0_31, %c0_32] : memref<1x16x16xf32, #tpu.memory_space<vmem>>, vector<1x16x16xf32>
    tpu.vector_store %arg4[%c0_30, %c0_31, %c0_32], %92 {strides = array<i32>} : memref<1x16x16xf32, #tpu.memory_space<vmem>>, vector<1x16x16xf32>,
    return
  }
  func.func @transform_0(%arg0: i32) -> (i32, i32, i32) {
    %c0_i32 = arith.constant 0 : i32
    %c0_i32_0 = arith.constant 0 : i32
    %c0_i32_1 = arith.constant 0 : i32
    return %arg0, %c0_i32, %c0_i32_0 : i32, i32, i32
  }
  func.func @transform_1(%arg0: i32) -> (i32, i32, i32) {
    %c0_i32 = arith.constant 0 : i32
    %c0_i32_0 = arith.constant 0 : i32
    %c0_i32_1 = arith.constant 0 : i32
    %c0_i32_2 = arith.constant 0 : i32
    return %c0_i32, %c0_i32_0, %c0_i32_1 : i32, i32, i32
  }
  func.func @transform_2(%arg0: i32) -> (i32, i32) {
    %c0_i32 = arith.constant 0 : i32
    %c0_i32_0 = arith.constant 0 : i32
    %c0_i32_1 = arith.constant 0 : i32
    return %c0_i32, %c0_i32_0 : i32, i32
  }
  func.func @transform_3(%arg0: i32) -> (i32, i32, i32) {
    %c0_i32 = arith.constant 0 : i32
    %c0_i32_0 = arith.constant 0 : i32
    %c0_i32_1 = arith.constant 0 : i32
    return %arg0, %c0_i32, %c0_i32_0 : i32, i32, i32
  }
}

</mosaic_0001>

<bundles_post_ra>
// kernel: tpu_custom_call.1
= control target key start
LH: loop header
LB: loop body
LE: loop exit
PB: predicated region body
PF: predicated region fallthrough
CT: control target
= control target key end

     0   :  { %8 = vsyncpa [#allocation3], 0  ;;  %s1148_s0 = inlined_call_operand.vmem [shape: f32[2,16,4], index: 0, kind: input, shape index: {}]   ;;  %s1149_s1 = inlined_call_operand.vmem [shape: f32[3,4,16], index: 1, kind: input, shape index: {}]   ;;  %s1150_s2 = inlined_call_operand.vmem [shape: f32[3,16], index: 2, kind: input, shape index: {}]   ;;  %s1151_s3 = inlined_call_operand.hbm [shape: f32[2,16,16], index: 3, kind: output, shape index: {}]  }
   0x1   :  { %10 = vsyncpa [#allocation3 + $0x1], 0  ;;  %s999_s12 = smov 0   ;;  %s1001_s13 = smov 0  }
   0x2   :  { %s1003_s14 = smov 0   ;;  %s1005_s15 = smov 0  }
   0x3 LB: > { %s1020_s16 = sadd.s32 4294967295, %s969_s15   ;;  %s770_s17 = sadd.s32 4294967294, %s969_s15   ;;  %s969_s15 = sphi %s1005_s15, %s1157_s15   ;;  %s965_s14 = sphi %s1003_s14, %s1156_s14   ;;  %s961_s13 = sphi %s1001_s13, %s1155_s13   ;;  %s957_s12 = sphi %s999_s12, %s1154_s12  }
   0x4   : > { %s1024_s18 = sadd.s32 1, %s969_s15   ;;  %s91_s19 = sadd.s32 1, %s965_s14 }
   0x5   : > { %s88_s20 = ssub.s32 %s969_s15, %s1024_s18  ;;  %p101_p0 = scmp.ne.s32.totalorder %s965_s14, %s961_s13 }
   0x6   : > { %p89_p1 = scmp.eq.s32.totalorder %s88_s20, 0  ;;  %p102_p2 = scmp.eq.s32.totalorder %s1020_s16, 1 }
   0x7   : > { %p107_p3 = scmp.ne.s32.totalorder %s961_s13, %s957_s12  ;;  %p108_p4 = scmp.eq.s32.totalorder %s770_s17, 1 }
   0x8   : > { %s1035_s21 = scalar_select %p89_p1, %s965_s14, %s91_s19  }
   0x9   : > { %p1037_p5 = por %p102_p2, %p101_p0  ;;  %p1041_p6 = por %p108_p4, %p107_p3 }
   0xa   : > { %p773_p7 = scmp.ge.s32.totalorder %s969_s15, 1  ;;  %p140_p8 = scmp.lt.s32.totalorder %s969_s15, 3 }
   0xc   : > { %p141_p9 = pnand %p773_p7, %p140_p8 }
   0xd   : > { %v777_v0 = vld [vmem:[%s1149_s1 + $0x4] sm:$0xf] (!%p141_p9)  ;;  %vm187_vm0 = vcmask (!%p141_p9), 1043456   ;;  %p164_p10 = scmp.lt.s32.totalorder (!%p141_p9), %s1020_s16, 1  ;;  %v179_v1 = vld [vmem:[%s1149_s1] sm:$0xf] (!%p141_p9)  ;;  %v443_v13 = vlaneseq (!%p141_p9) }
   0xe   : > { %144 = sbr.rel (%p141_p9) target bundleno = 787 (0x313), region = 32  ;;  %817 = vmatprep.subr.msk.mxu0 (!%p141_p9), %vm187_vm0, %v777_v0  ;;  %vm182_vm1 = vcmask (!%p141_p9), 31744   ;;  %vm173_vm2 = vcmask (!%p141_p9), 1040384   ;;  %v784_v5 = vld [vmem:[%s1149_s1 + $0x8] sm:$0xf] (!%p141_p9)  ;;  %vm349_vm3 = vcmask (!%p141_p9), 1046528  }
   0xf   : > { %818 = vmatpush3.msk.msra.mxu0 (!%p141_p9), %vm187_vm0, %v777_v0  ;;  %v1075_v14 = vshrl.u32 (!%p141_p9), %v443_v13, 7  ;;  %v474_v15 = vand.u32 (!%p141_p9), 127, %v443_v13  ;;  %v971_v17 = vmov (!%p141_p9), 0.0|0.0   ;;  %vm972_vm4 = vmmov (!%p141_p9), 0   ;;  %v442_v24 = vld [vmem:[%s1150_s2] sm:$0x7] (!%p141_p9) }
  0x10   : > { %822 = vmatprep.subr.msk.mxu0 (!%p141_p9), %vm187_vm0, %v179_v1  ;;  %844 = vmatprep.subr.bf16.mxu1 (!%p141_p9), %v971_v17  ;;  %v973_v20 = vmov (!%p141_p9), 0.0   ;;  %v974_v22 = vmov (!%p141_p9), 1.0|1.0   ;;  %vm449_vm12 = vcmask (!%p141_p9), 130048   ;;  %v975_v54 = vmov (!%p141_p9), 1.0   ;;  %s161_s10 = sand.u32 (!%p141_p9), 1, %s961_s13  }
  0x11   : > { %v472_v16 = vadd.s32 (!%p141_p9), 8, %v1075_v14  ;;  %v475_v18 = vmul.u32 (!%p141_p9), 2, %v474_v15  ;;  %v478_v19 = vadd.s32 (!%p141_p9), 1, %v474_v15  ;;  %836 = vmatprep.mubr.msk.f32.mxu1 (!%p141_p9), %vm972_vm4, %v973_v20  ;;  %v445_v23 = vsub.s32 (!%p141_p9), 0, %v1075_v14  ;;  %s774_s11 = sshll.u32 (!%p141_p9), %s161_s10, 4  ;;  %s802_s17 = sshll.u32 (!%p141_p9), %s1020_s16, 8 }
  0x12   : > { %v490_v41 = vadd.s32 (!%p141_p9), 1, %v1075_v14  ;;  %v488_v46 = vmul.u32 (!%p141_p9), 2, %v1075_v14  ;;  %s163_s19 = scalar_lea.vmem (!%p141_p9), [#allocation2], %s774_s11  ;;  %s1101_s26 = scalar_lea.hbm (!%p141_p9), %s1151_s3, %s802_s17 }
  0x13   : > { %vm476_vm5 = vcmp.ge.s32.totalorder (!%p141_p9), %v1075_v14, %v475_v18  ;;  %v479_v21 = vmul.u32 (!%p141_p9), 2, %v478_v19  ;;  %vm477_vm6 = vcmp.ge.s32.totalorder (!%p141_p9), %v472_v16, %v475_v18  ;;  %v446_v25 = vrot.slane (!%p141_p9), %v442_v24, %v445_v23  ;;  %s708_s20 = sshll.u32 (!%p141_p9), %s163_s19, 4  ;;  %s1103_s20 = int_to_ptr.vmem [resolvable:$true] %s708_s20 }
  0x14   : > { %v491_v47 = vmul.u32 (!%p141_p9), 2, %v490_v41  ;;  %vm489_vm13 = vcmp.ge.s32.totalorder (!%p141_p9), %v474_v15, %v488_v46  ;;  %s907_s27 = scalar_lea.vmem (!%p141_p9), %s1103_s20, 256 }
  0x15   : > { %s165_s28 = scalar_select %p164_p10, %s1020_s16, 1  ;;  %vm480_vm7 = vcmp.lt.s32.totalorder %v1075_v14, %v479_v21  ;;  %vm481_vm8 = vcmp.lt.s32.totalorder %v472_v16, %v479_v21 }
  0x16   : > { %vm482_vm9 = vmand %vm476_vm5, %vm480_vm7  ;;  %vm492_vm14 = vcmp.lt.s32.totalorder %v474_v15, %v491_v47  ;;  %s1107_s16 = scalar_lea.sflag [#allocation3], %s161_s10  ;;  %p908_p11 = scmp.ne.s32.totalorder %s1103_s20, %s907_s27 }
  0x17   : > { %s801_s29 = sshll.u32 %s165_s28, 4  ;;  %vm483_vm10 = vmand %vm477_vm6, %vm481_vm8  ;;  %s976_s28 = smov [#allocation2]  }
  0x18   : > { %s168_s5 = scalar_lea.vmem %s1148_s0, %s801_s29  ;;  %vm845_vm11 = vmpackc.low %vm483_vm10, %vm482_vm9  ;;  %p909_p12 = pnand %p908_p11, %p1037_p5 }
  0x19   : > { %v169_v2 = vld [vmem:[%s168_s5] sm:$0xff]  ;;  %v170_v3 = vld [vmem:[%s168_s5 + $0x8] sm:$0xff]  ;;  %846 = vmatpush3.bf16.msk.msra.mxu1 %vm845_vm11, %v974_v22  ;;  %vm493_vm15 = vmand %vm489_vm13, %vm492_vm14  ;;  %s911_s29 = sshll.u32 %s976_s28, 4  ;;  %s912_s29 = int_to_ptr.vmem [resolvable:$false] %s911_s29 }
  0x1a   : > { %v174_v4 = vrot.slane %v169_v2, 7  ;;  %819 = vmatprep.mubr.msk.f32.mxu0 %vm182_vm1, %v169_v2  ;;  %v175_v6 = vrot.slane %v170_v3, 7  ;;  %v350_v8 = vrot.slane %v169_v2, 1  ;;  %v351_v9 = vrot.slane %v170_v3, 1  ;;  %839 = vmatprep.subr.mxu1 %v973_v20  ;;  %p910_p13 = pneg %p909_p12  ;;  %s913_s30 = scalar_lea.vmem %s912_s29, 512 }
  0x1b   : > { %820 = vmatmul.mubr.msk.f32.vlgmr.msra.gmra.mrb[0].mxu0 %vm182_vm1, %v170_v3  ;;  %p914_p0 = scmp.lt.s32.totalorder %s1103_s20, %s912_s29  ;;  %p915_p1 = scmp.lt.s32.totalorder %s913_s30, %s907_s27 }
  0x1c   : > { %823 = vmatpush3.msk.msra.mxu0 %vm187_vm0, %v179_v1  ;;  %v178_v7 = vsel %vm173_vm2, 0.0, %v174_v4  ;;  %v176_v10 = vsel %vm173_vm2, %v174_v4, %v175_v6  ;;  %v352_v11 = vsel %vm349_vm3, %v350_v8, %v351_v9  ;;  %v354_v12 = vsel %vm349_vm3, %v351_v9, 0.0 }
  0x1d   : > { %824 = vmatprep.mubr.msk.f32.mxu0 %vm182_vm1, %v178_v7  ;;  %827 = vmatprep.subr.msk.mxu0 %vm187_vm0, %v784_v5  ;;  %v664_v4 = vsub.s32 1, %v1075_v14  ;;  %v670_v8 = vsub.s32 2, %v1075_v14  ;;  %p916_p2 = por %p915_p1, %p914_p0 }
  0x1f   : > { %p917_p3 = pnand %p916_p2, %p910_p13 }
  0x23   : > { %825 = vmatmul.mubr.msk.f32.vlgmr.msra.gmra.mrb[0].mxu0 %vm182_vm1, %v176_v10 }
  0x24   : > { %828 = vmatpush3.msk.msra.mxu0 %vm187_vm0, %v784_v5  ;;  %829 = vmatprep.mubr.msk.f32.mxu0 %vm182_vm1, %v352_v11  ;;  %vm570_vm0 = vcmask 64512  }
  0x2b   : > { %830 = vmatmul.mubr.msk.f32.vlgmr.msra.gmra.mrb[0].mxu0 %vm182_vm1, %v354_v12 }
  0xfe   : > { %v831_v26 = vpop.f32.mrb[0].mxu0 }
  0xff   : > { %v448_v27 = vadd.f32 %v831_v26, %v446_v25  ;;  %v431_v28 = vpop.f32.mrb[1].mxu0 }
 0x100   : > { %v447_v29 = vadd.f32 %v446_v25, %v431_v28 }
 0x101   : > { %v451_v30 = vsel %vm449_vm12, %v448_v27, 0.0  ;;  %v460_v31 = vmul.f32 %v448_v27, %v448_v27 }
 0x102   : > { %v450_v32 = vsel %vm449_vm12, %v447_v29, 0.0  ;;  %v459_v33 = vmul.f32 %v447_v29, %v447_v29 }
 0x103   : > { %v462_v34 = vsel %vm449_vm12, %v460_v31, 0.0  ;;  %v452_v35 = vadd.f32 %v451_v30, %v450_v32 }
 0x104   : > { %v461_v36 = vsel %vm449_vm12, %v459_v33, 0.0 }
 0x105   : > { %v453_v37 = vrot.slane %v452_v35, 4  ;;  %v463_v38 = vadd.f32 %v462_v34, %v461_v36 }
 0x107   : > { %v454_v39 = vadd.f32 %v453_v37, %v452_v35  ;;  %v464_v40 = vrot.slane %v463_v38, 4 }
 0x109   : > { %v455_v42 = vrot.slane %v454_v39, 2  ;;  %v465_v43 = vadd.f32 %v464_v40, %v463_v38 }
 0x10b   : > { %v456_v44 = vadd.f32 %v455_v42, %v454_v39  ;;  %v466_v45 = vrot.slane %v465_v43, 2 }
 0x10d   : > { %v457_v48 = vrot.slane %v456_v44, 1  ;;  %v467_v49 = vadd.f32 %v466_v45, %v465_v43 }
 0x10f   : > { %v468_v50 = vrot.slane %v467_v49, 1  ;;  %v458_v51 = vadd.f32 %v457_v48, %v456_v44 }
 0x111   : > { %v469_v52 = vadd.f32 %v468_v50, %v467_v49 }
 0x113   : > { %v496_v53 = vsel %vm173_vm2, %v458_v51, %v469_v52 }
 0x114   : > { %837 = vmatmul.mubr.msk.f32.vlgmr.msra.gmra.mrb[0].mxu1 %vm449_vm12, %v496_v53 }
 0x115   : > { %840 = vmatpush3.msk.msra.mxu1 %vm493_vm15, %v975_v54  ;;  %841 = vmatprep.mubr.msk.f32.mxu1 %vm972_vm4, %v973_v20 }
 0x1e7   : > { %v566_v55 = vpop.f32.mrb[0].mxu1 }
 0x1e8   : > { %v838_v56 = vpop.f32.mrb[1].mxu1  ;;  %842 = vmatmul.mubr.msk.f32.vlgmr.msra.gmra.mrb[2].mxu1 %vm570_vm0, %v566_v55 }
 0x2bb   : > { %v640_v57 = vpop.f32.mrb[2].mxu1 }
 0x2bc   : > { %v644_v58 = vmul.f32 0.03125, %v640_v57  ;;  %v843_v59 = vpop.f32.mrb[3].mxu1 }
 0x2be   : > { %v645_v60 = vmul.f32 %v644_v58, %v644_v58 }
 0x2c0   : > { %v647_v61 = vrot.slane %v645_v60, 7 }
 0x2c2   : > { %v649_v62 = vsub.f32 %v644_v58, %v647_v61 }
 0x2c4   : > { %v650_v63 = vmax.f32 %v649_v62, 0.0 }
 0x2c6   : > { %v651_v0 = vadd.f32 1e-05, %v650_v63 }
 0x2c8   : > { %897 = vrsqrt.f32 %v651_v0 }
 0x2d2   : > { %v898_v1 = vpop.eup %897 }
 0x2d3   : > { %v653_v2 = vmul.f32 %v898_v1, %v442_v24 }
 0x2d5   : > { %v655_v3 = vrot.slane %v653_v2, 1  ;;  %v665_v7 = vrot.slane %v653_v2, %v664_v4 }
 0x2d7   : > { %v657_v5 = vmul.f32 %v655_v3, %v644_v58  ;;  %v666_v10 = vmul.f32 %v665_v7, %v447_v29  ;;  %v667_v11 = vmul.f32 %v665_v7, %v448_v27 }
 0x2d9   : > { %v659_v6 = vrot.slane %v657_v5, 6 }
 0x2db   : > { %v661_v9 = vsub.f32 %v442_v24, %v659_v6 }
 0x2dd   : > { %v671_v12 = vrot.slane %v661_v9, %v670_v8 }
 0x2df   : > { %v672_v13 = vadd.f32 %v671_v12, %v666_v10  ;;  %v673_v15 = vadd.f32 %v671_v12, %v667_v11 }
 0x2e1   : > { %v674_v16 = vmin.f32 %v672_v13, 20.0  ;;  %v675_v17 = vmin.f32 %v673_v15, 20.0 }
 0x2e3   : > { %v676_v18 = vmul.f32 1.442695, %v674_v16  ;;  %v678_v19 = vmul.f32 1.442695, %v675_v17 }
 0x2e5   : > { %899 = vpow2.f32 %v676_v18 }
 0x2e6   : > { %901 = vpow2.f32 %v678_v19 }
 0x2ef   : > { %v900_v20 = vpop.eup %899 }
 0x2f0   : > { %v902_v21 = vpop.eup %901  ;;  %v680_v22 = vadd.f32 2.0, %v900_v20 }
 0x2f1   : > { %v681_v23 = vadd.f32 2.0, %v902_v21 }
 0x2f2   : > { %v682_v25 = vmul.f32 %v900_v20, %v680_v22 }
 0x2f3   : > { %v683_v14 = vmul.f32 %v902_v21, %v681_v23 }
 0x2f4   : > { %v686_v24 = vadd.f32 2.0, %v682_v25  ;;  %v684_v27 = vmul.f32 %v682_v25, %v672_v13 }
 0x2f5   : > { %v687_v26 = vadd.f32 2.0, %v683_v14  ;;  %v685_v29 = vmul.f32 %v683_v14, %v673_v15 }
 0x2f6   : > { %903 = vrcp.f32 %v686_v24 }
 0x2f7   : > { %905 = vrcp.f32 %v687_v26 }
 0x300   : > { %v904_v28 = vpop.eup %903 }
 0x301   : > { %v906_v30 = vpop.eup %905  ;;  %v690_v31 = vmul.f32 %v904_v28, %v684_v27 }
 0x302   : > { %v691_v32 = vmul.f32 %v906_v30, %v685_v29 }
 0x303   : > { %692 = vst.msk [vmem:[%s163_s19] sm:$0xff] %vm449_vm12, %v690_v31 }
 0x304   : > { %693 = vst.msk [vmem:[%s163_s19 + $0x8] sm:$0xff] %vm449_vm12, %v691_v32 }
 0x305   : > { %920 = shalt.err (!%p917_p3)
}
 0x306   : > { %s921_s4 = scalar_lea.hbm %s1101_s26, 256  ;;  %s925_s7 = scalar_lea.hbm %s1151_s3, 512 }
 0x307   : > { %p922_p4 = scmp.ne.s32.totalorder %s1101_s26, %s921_s4  ;;  %p926_p9 = scmp.lt.u32.totalorder %s1101_s26, %s1151_s3 }
 0x308   : > { %p927_p10 = scmp.lt.u32.totalorder %s925_s7, %s921_s4  ;;  %p929_p12 = scmp.lt.u32.totalorder %s921_s4, %s1101_s26 }
 0x309   : > { %p923_p7 = pnand %p922_p4, %p1037_p5 }
 0x30a   : > { %p928_p11 = por %p927_p10, %p926_p9 }
 0x30b   : > { %p924_p8 = pneg %p923_p7 }
 0x30c   : > { %p930_p13 = por %p929_p12, %p928_p11 }
 0x30e   : > { %p931_p0 = pnand %p930_p13, %p924_p8 }
 0x310   : > { %934 = shalt.err (!%p931_p0)
}
 0x311   : > { %s977_s10 = smov 128   ;;  %s978_s11 = smov 8  }
 0x312   : > { %851 = dma.vmem_to_hbm [thread:$0]  (%p1037_p5), %s1103_s20, 256, %s1101_s26, %s1107_s16, %s977_s10, %s977_s10, %s978_s11  }
 0x313 PF: > { %p857_p1 = scmp.ge.s32.totalorder %s969_s15, 2  ;;  %s723_s17 = sand.u32 1, %s957_s12  }
 0x314   : > { %s724_s19 = scalar_lea.sflag [#allocation3], %s723_s17 }
 0x315   : > { %p854_p2 = pnand %p857_p1, %p1041_p6 }
 0x317   : > { %952 = dma.done.wait (!%p854_p2), %s724_s19, 256  }
 0x318   : > { %954 = vsyncadd (!%p854_p2), %s724_s19, 4294967040  ;;  %p13_p3 = scmp.ge.s32.totalorder %s1024_s18, 4   ;;  %s1154_s12 = smov %s961_s13 }
 0x319   : > { %s1155_s13 = smov %s965_s14  ;;  %s1156_s14 = smov %s1035_s21 }
 0x31a   : > { %s1157_s15 = smov %s1024_s18  ;;  %15 = sbr.rel (!%p13_p3) target bundleno = 3 (0x3), region = 69 }
 0x321   :  { %729 = vsyncpa [#allocation3], 1 }
 0x322   :  { %731 = vsyncpa [#allocation3 + $0x1], 1 }

</bundles_post_ra>
